<compile_context>
chip_gen: v7x
topology: tpu7x:2x2x1
jax: 0.10.0
libtpu: 0.0.40
codegen_flags: <defaults>
</compile_context>

<pallas_src>
import jax
import jax.numpy as jnp
from jax import lax
from jax.experimental import pallas as pl
from jax.experimental.pallas import tpu as pltpu

HIDDEN_IN = 128
HIDDEN_OUT = 128


def _vpg_kernel(x_ref,                         # (TILE_B, obs) f32  (state block)
                g_ref,                         # (A, TILE_B) f32    (Gumbel noise)
                w1_ref, b1_ref,                # (H, obs) bf16, (H, 1) f32
                w2_ref, b2_ref,                # (H, H)  bf16, (H, 1) f32
                w3_ref, b3_ref,                # (A, H)  bf16, (A, 1) f32
                logp_ref,                      # (1, TILE_B) f32
                act_ref):                      # (1, TILE_B) int32
    # In-kernel cast; the obs axis is contracted directly (no transpose pass).
    x = x_ref[...].astype(jnp.bfloat16)                             # (TB, obs)

    # --- MLP hot path: 3 MXU matmuls (bf16 in, f32 accumulate) + VPU ReLU ---
    h1 = lax.dot_general(w1_ref[...], x, (((1,), (1,)), ((), ())),
                         preferred_element_type=jnp.float32) + b1_ref[...]
    h1 = jnp.maximum(h1, 0.0).astype(jnp.bfloat16)                  # (H, TB)
    h2 = jnp.dot(w2_ref[...], h1,
                 preferred_element_type=jnp.float32) + b2_ref[...]
    h2 = jnp.maximum(h2, 0.0).astype(jnp.bfloat16)                  # (H, TB)
    logits = (jnp.dot(w3_ref[...], h2, preferred_element_type=jnp.float32)
              + b3_ref[...])                                        # (A, TB) f32

    # --- log-softmax over the action (sublane) axis ---
    m = jnp.max(logits, axis=0, keepdims=True)
    z = logits - m
    lse = jnp.log(jnp.sum(jnp.exp(z), axis=0, keepdims=True))
    log_probs = z - lse                                             # (A, TB)

    # --- Categorical sample via Gumbel-max (noise streamed in) ---
    pert = logits + g_ref[...]                                      # (A, TB)
    pmax = jnp.max(pert, axis=0, keepdims=True)

    a_dim = logits.shape[0]
    idx = lax.broadcasted_iota(jnp.int32, logits.shape, 0)          # action ids
    # first index attaining the max (argmax with first-hit tie-break)
    action = jnp.min(jnp.where(pert == pmax, idx, a_dim),
                     axis=0, keepdims=True)                         # (1, TB) i32

    # --- log_prob(action) gather via select + max-reduce (no one-hot FLOPs) ---
    logp = jnp.max(jnp.where(idx == action, log_probs, -jnp.inf),
                   axis=0, keepdims=True)                           # (1, TB) f32

    logp_ref[...] = logp
    act_ref[...] = action


def _round_up(x, m):
    return ((x + m - 1) // m) * m


def vpg_forward(state, params, key, *, tile_b=1024):
    """state: (B, obs) f32.  Returns (log_prob (B,) f32, action (B,) int32).

    tile_b: batch tile (multiple of 128).  Clamped so that the grid has at
    least two steps when B allows it (keeps both v7x TensorCores busy under
    "parallel" semantics); large tiles amortize per-grid-step overhead on
    v5e/v6e."""
    w1, b1, w2, b2, w3, b3 = params
    B, obs_dim = state.shape
    act_dim = w3.shape[0]

    # Pick an effective tile: multiple of 128, >= 2 grid steps when possible.
    tb = max(128, min(tile_b, _round_up(pl.cdiv(B, 2), 128)))
    num_tiles = pl.cdiv(B, tb)

    # Gumbel(0,1) noise, action-major so no in-kernel transpose is needed.
    gumbel = jax.random.gumbel(key, (act_dim, B), jnp.float32)

    grid_spec = pltpu.PrefetchScalarGridSpec(
        num_scalar_prefetch=0,
        grid=(num_tiles,),
        in_specs=[
            # State blocks straight from the original (B, obs) array.
            pl.BlockSpec((tb, obs_dim), lambda i: (i, 0)),
            # Gumbel noise blocks, batch on lanes.
            pl.BlockSpec((act_dim, tb), lambda i: (0, i)),
            # Weights/biases: constant index_map -> resident in VMEM.
            pl.BlockSpec((HIDDEN_IN, obs_dim), lambda i: (0, 0)),
            pl.BlockSpec((HIDDEN_IN, 1), lambda i: (0, 0)),
            pl.BlockSpec((HIDDEN_OUT, HIDDEN_IN), lambda i: (0, 0)),
            pl.BlockSpec((HIDDEN_OUT, 1), lambda i: (0, 0)),
            pl.BlockSpec((act_dim, HIDDEN_OUT), lambda i: (0, 0)),
            pl.BlockSpec((act_dim, 1), lambda i: (0, 0)),
        ],
        out_specs=(
            pl.BlockSpec((1, tb), lambda i: (0, i)),
            pl.BlockSpec((1, tb), lambda i: (0, i)),
        ),
    )

    logp, act = pl.pallas_call(
        _vpg_kernel,
        out_shape=(
            jax.ShapeDtypeStruct((1, B), jnp.float32),
            jax.ShapeDtypeStruct((1, B), jnp.int32),
        ),
        grid_spec=grid_spec,
        compiler_params=pltpu.CompilerParams(
            dimension_semantics=("parallel",),
            vmem_limit_bytes=32 * 1024 * 1024,
        ),
    )(state, gumbel, w1, b1, w2, b2, w3, b3)

    return logp[0], act[0]


def init_params(key, obs_dim, act_dim):
    """PyTorch-style U(-1/sqrt(fan_in), 1/sqrt(fan_in)) init.
    Weights kept in PyTorch (out, in) layout, cast to bf16 for the MXU;
    biases stored as (out, 1) f32 columns."""
    ks = jax.random.split(key, 6)

    def layer(kw, kb, fan_in, fan_out):
        bound = 1.0 / jnp.sqrt(jnp.float32(fan_in))
        w = jax.random.uniform(kw, (fan_out, fan_in), jnp.float32, -bound, bound)
        b = jax.random.uniform(kb, (fan_out, 1), jnp.float32, -bound, bound)
        return w.astype(jnp.bfloat16), b

    w1, b1 = layer(ks[0], ks[1], obs_dim, HIDDEN_IN)
    w2, b2 = layer(ks[2], ks[3], HIDDEN_IN, HIDDEN_OUT)
    w3, b3 = layer(ks[4], ks[5], HIDDEN_OUT, act_dim)
    return (w1, b1, w2, b2, w3, b3)


def _ref_logits(state, params):
    """Pure-JAX bf16 MLP mirroring the kernel math (for validation)."""
    w1, b1, w2, b2, w3, b3 = params
    x = state.astype(jnp.bfloat16)
    h1 = jnp.maximum(
        jnp.dot(x, w1.T, preferred_element_type=jnp.float32) + b1[:, 0], 0.0
    ).astype(jnp.bfloat16)
    h2 = jnp.maximum(
        jnp.dot(h1, w2.T, preferred_element_type=jnp.float32) + b2[:, 0], 0.0
    ).astype(jnp.bfloat16)
    return jnp.dot(h2, w3.T, preferred_element_type=jnp.float32) + b3[:, 0]


if __name__ == "__main__":
    key = jax.random.PRNGKey(0)
    k_param, k_state, k_sample = jax.random.split(key, 3)

    batch = 256          # two 128-row batch tiles -> exercises the grid
    obs_dim = 16         # observation_space
    act_dim = 4          # action_space

    params = init_params(k_param, obs_dim, act_dim)
    state = jax.random.normal(k_state, (batch, obs_dim), jnp.float32)

    log_prob, action = vpg_forward(state, params, k_sample)
    jax.block_until_ready((log_prob, action))

    assert log_prob.shape == (batch,) and action.shape == (batch,)
    assert log_prob.dtype == jnp.float32 and action.dtype == jnp.int32
    assert bool(jnp.all(log_prob <= 1e-5))
    assert bool(jnp.all((action >= 0) & (action < act_dim)))

    # Cross-check log_prob against a pure-JAX log-softmax of the same bf16 MLP
    # evaluated at the kernel's sampled actions.
    ref_lp = jax.nn.log_softmax(_ref_logits(state, params), axis=-1)
    ref_logp = ref_lp[jnp.arange(batch), action]
    assert bool(jnp.max(jnp.abs(ref_logp - log_prob)) < 5e-2)

    print("KERNEL_OK")
</pallas_src>

<mosaic_0001>
module attributes {stable_mosaic.version = 11 : i64} {
  func.func @_vpg_kernel(%arg0: i32, %arg1: memref<128x16xf32, #tpu.memory_space<vmem>>, %arg2: memref<4x128xf32, #tpu.memory_space<vmem>>, %arg3: memref<128x16xbf16, #tpu.memory_space<vmem>>, %arg4: memref<128x1xf32, #tpu.memory_space<vmem>>, %arg5: memref<128x128xbf16, #tpu.memory_space<vmem>>, %arg6: memref<128x1xf32, #tpu.memory_space<vmem>>, %arg7: memref<4x128xbf16, #tpu.memory_space<vmem>>, %arg8: memref<4x1xf32, #tpu.memory_space<vmem>>, %arg9: memref<1x128xf32, #tpu.memory_space<vmem>>, %arg10: memref<1x128xi32, #tpu.memory_space<vmem>>) attributes {dimension_semantics = [#tpu.dimension_semantics<parallel>], iteration_bounds = array<i64: 2>, scalar_prefetch = 0 : i64, scratch_operands = 0 : i64, tpu.core_type = #tpu.core_type<tc>, window_params = [{transform_indices = @transform_0, window_bounds = array<i64: 128, 16>}, {transform_indices = @transform_1, window_bounds = array<i64: 4, 128>}, {pipeline_mode = #tpu.pipeline_mode<synchronous>, transform_indices = @transform_2, window_bounds = array<i64: 128, 16>}, {pipeline_mode = #tpu.pipeline_mode<synchronous>, transform_indices = @transform_3, window_bounds = array<i64: 128, 1>}, {pipeline_mode = #tpu.pipeline_mode<synchronous>, transform_indices = @transform_4, window_bounds = array<i64: 128, 128>}, {pipeline_mode = #tpu.pipeline_mode<synchronous>, transform_indices = @transform_5, window_bounds = array<i64: 128, 1>}, {pipeline_mode = #tpu.pipeline_mode<synchronous>, transform_indices = @transform_6, window_bounds = array<i64: 4, 128>}, {pipeline_mode = #tpu.pipeline_mode<synchronous>, transform_indices = @transform_7, window_bounds = array<i64: 4, 1>}, {transform_indices = @transform_8, window_bounds = array<i64: 1, 128>}, {transform_indices = @transform_9, window_bounds = array<i64: 1, 128>}]} {
    %c0 = arith.constant 0 : index
    %c0_0 = arith.constant 0 : index
    %0 = vector.load %arg1[%c0, %c0_0] : memref<128x16xf32, #tpu.memory_space<vmem>>, vector<128x16xf32>
    %1 = arith.truncf %0 : vector<128x16xf32> to vector<128x16xbf16>
    %c0_1 = arith.constant 0 : index
    %c0_2 = arith.constant 0 : index
    %2 = vector.load %arg3[%c0_1, %c0_2] : memref<128x16xbf16, #tpu.memory_space<vmem>>, vector<128x16xbf16>
    %cst = arith.constant dense<0.000000e+00> : vector<128x128xf32>
    %3 = tpu.matmul %2, %1, %cst {dimension_numbers = #tpu.dot_dimension_numbers<[1], [1], [0], [0], [0, 0, 1, 0], [], []>} : vector<128x16xbf16>, vector<128x16xbf16>, vector<128x128xf32> -> vector<128x128xf32>
    %c0_3 = arith.constant 0 : index
    %c0_4 = arith.constant 0 : index
    %4 = vector.load %arg4[%c0_3, %c0_4] : memref<128x1xf32, #tpu.memory_space<vmem>>, vector<128x1xf32>
    %5 = vector.broadcast %4 : vector<128x1xf32> to vector<128x128xf32>
    %6 = arith.addf %3, %5 : vector<128x128xf32>
    %cst_5 = arith.constant 0.000000e+00 : f32
    %7 = vector.broadcast %cst_5 : f32 to vector<128x128xf32>
    %8 = arith.maximumf %6, %7 : vector<128x128xf32>
    %9 = arith.truncf %8 : vector<128x128xf32> to vector<128x128xbf16>
    %c0_6 = arith.constant 0 : index
    %c0_7 = arith.constant 0 : index
    %10 = vector.load %arg5[%c0_6, %c0_7] : memref<128x128xbf16, #tpu.memory_space<vmem>>, vector<128x128xbf16>
    %cst_8 = arith.constant dense<0.000000e+00> : vector<128x128xf32>
    %11 = tpu.matmul %10, %9, %cst_8 {dimension_numbers = #tpu.dot_dimension_numbers<[1], [0], [0], [1], [0, 0, 1, 1], [], []>} : vector<128x128xbf16>, vector<128x128xbf16>, vector<128x128xf32> -> vector<128x128xf32>
    %c0_9 = arith.constant 0 : index
    %c0_10 = arith.constant 0 : index
    %12 = vector.load %arg6[%c0_9, %c0_10] : memref<128x1xf32, #tpu.memory_space<vmem>>, vector<128x1xf32>
    %13 = vector.broadcast %12 : vector<128x1xf32> to vector<128x128xf32>
    %14 = arith.addf %11, %13 : vector<128x128xf32>
    %cst_11 = arith.constant 0.000000e+00 : f32
    %15 = vector.broadcast %cst_11 : f32 to vector<128x128xf32>
    %16 = arith.maximumf %14, %15 : vector<128x128xf32>
    %17 = arith.truncf %16 : vector<128x128xf32> to vector<128x128xbf16>
    %c0_12 = arith.constant 0 : index
    %c0_13 = arith.constant 0 : index
    %18 = vector.load %arg7[%c0_12, %c0_13] : memref<4x128xbf16, #tpu.memory_space<vmem>>, vector<4x128xbf16>
    %cst_14 = arith.constant dense<0.000000e+00> : vector<4x128xf32>
    %19 = tpu.matmul %18, %17, %cst_14 {dimension_numbers = #tpu.dot_dimension_numbers<[1], [0], [0], [1], [0, 0, 1, 1], [], []>} : vector<4x128xbf16>, vector<128x128xbf16>, vector<4x128xf32> -> vector<4x128xf32>
    %c0_15 = arith.constant 0 : index
    %c0_16 = arith.constant 0 : index
    %20 = vector.load %arg8[%c0_15, %c0_16] : memref<4x1xf32, #tpu.memory_space<vmem>>, vector<4x1xf32>
    %21 = vector.broadcast %20 : vector<4x1xf32> to vector<4x128xf32>
    %22 = arith.addf %19, %21 : vector<4x128xf32>
    %cst_17 = arith.constant dense<0xFF800000> : vector<128xf32>
    %23 = vector.multi_reduction <maximumf>, %22, %cst_17 [0] : vector<4x128xf32> to vector<128xf32>
    %24 = vector.shape_cast %23 : vector<128xf32> to vector<1x128xf32>
    %25 = vector.broadcast %24 : vector<1x128xf32> to vector<4x128xf32>
    %26 = arith.subf %22, %25 : vector<4x128xf32>
    %27 = math.exp %26 : vector<4x128xf32>
    %cst_18 = arith.constant dense<0.000000e+00> : vector<128xf32>
    %28 = vector.multi_reduction <add>, %27, %cst_18 [0] : vector<4x128xf32> to vector<128xf32>
    %29 = vector.shape_cast %28 : vector<128xf32> to vector<1x128xf32>
    %30 = math.log %29 : vector<1x128xf32>
    %31 = vector.broadcast %30 : vector<1x128xf32> to vector<4x128xf32>
    %32 = arith.subf %26, %31 : vector<4x128xf32>
    %c0_19 = arith.constant 0 : index
    %c0_20 = arith.constant 0 : index
    %33 = vector.load %arg2[%c0_19, %c0_20] : memref<4x128xf32, #tpu.memory_space<vmem>>, vector<4x128xf32>
    %34 = arith.addf %22, %33 : vector<4x128xf32>
    %cst_21 = arith.constant dense<0xFF800000> : vector<128xf32>
    %35 = vector.multi_reduction <maximumf>, %34, %cst_21 [0] : vector<4x128xf32> to vector<128xf32>
    %36 = vector.shape_cast %35 : vector<128xf32> to vector<1x128xf32>
    %37 = tpu.iota {dimensions = array<i32: 0>} : vector<4x128xi32>
    %38 = vector.broadcast %36 : vector<1x128xf32> to vector<4x128xf32>
    %39 = arith.cmpf oeq, %34, %38 : vector<4x128xf32>
    %c4_i32 = arith.constant 4 : i32
    %40 = vector.broadcast %c4_i32 : i32 to vector<4x128xi32>
    %41 = arith.select %39, %37, %40 : vector<4x128xi1>, vector<4x128xi32>
    %cst_22 = arith.constant dense<2147483647> : vector<128xi32>
    %42 = vector.multi_reduction <minsi>, %41, %cst_22 [0] : vector<4x128xi32> to vector<128xi32>
    %43 = vector.shape_cast %42 : vector<128xi32> to vector<1x128xi32>
    %44 = vector.broadcast %43 : vector<1x128xi32> to vector<4x128xi32>
    %45 = arith.cmpi eq, %37, %44 : vector<4x128xi32>
    %cst_23 = arith.constant 0xFF800000 : f32
    %46 = vector.broadcast %cst_23 : f32 to vector<4x128xf32>
    %47 = arith.select %45, %32, %46 : vector<4x128xi1>, vector<4x128xf32>
    %cst_24 = arith.constant dense<0xFF800000> : vector<128xf32>
    %48 = vector.multi_reduction <maximumf>, %47, %cst_24 [0] : vector<4x128xf32> to vector<128xf32>
    %49 = vector.shape_cast %48 : vector<128xf32> to vector<1x128xf32>
    %c0_25 = arith.constant 0 : index
    %c0_26 = arith.constant 0 : index
    %50 = vector.load %arg9[%c0_25, %c0_26] : memref<1x128xf32, #tpu.memory_space<vmem>>, vector<1x128xf32>
    tpu.vector_store %arg9[%c0_25, %c0_26], %49 {strides = array<i32>} : memref<1x128xf32, #tpu.memory_space<vmem>>, vector<1x128xf32>,
    %c0_27 = arith.constant 0 : index
    %c0_28 = arith.constant 0 : index
    %51 = vector.load %arg10[%c0_27, %c0_28] : memref<1x128xi32, #tpu.memory_space<vmem>>, vector<1x128xi32>
    tpu.vector_store %arg10[%c0_27, %c0_28], %43 {strides = array<i32>} : memref<1x128xi32, #tpu.memory_space<vmem>>, vector<1x128xi32>,
    return
  }
  func.func @transform_0(%arg0: i32) -> (i32, i32) {
    %c0_i32 = arith.constant 0 : i32
    %c0_i32_0 = arith.constant 0 : i32
    return %arg0, %c0_i32 : i32, i32
  }
  func.func @transform_1(%arg0: i32) -> (i32, i32) {
    %c0_i32 = arith.constant 0 : i32
    %c0_i32_0 = arith.constant 0 : i32
    return %c0_i32, %arg0 : i32, i32
  }
  func.func @transform_2(%arg0: i32) -> (i32, i32) {
    %c0_i32 = arith.constant 0 : i32
    %c0_i32_0 = arith.constant 0 : i32
    %c0_i32_1 = arith.constant 0 : i32
    return %c0_i32, %c0_i32_0 : i32, i32
  }
  func.func @transform_3(%arg0: i32) -> (i32, i32) {
    %c0_i32 = arith.constant 0 : i32
    %c0_i32_0 = arith.constant 0 : i32
    %c0_i32_1 = arith.constant 0 : i32
    return %c0_i32, %c0_i32_0 : i32, i32
  }
  func.func @transform_4(%arg0: i32) -> (i32, i32) {
    %c0_i32 = arith.constant 0 : i32
    %c0_i32_0 = arith.constant 0 : i32
    %c0_i32_1 = arith.constant 0 : i32
    return %c0_i32, %c0_i32_0 : i32, i32
  }
  func.func @transform_5(%arg0: i32) -> (i32, i32) {
    %c0_i32 = arith.constant 0 : i32
    %c0_i32_0 = arith.constant 0 : i32
    %c0_i32_1 = arith.constant 0 : i32
    return %c0_i32, %c0_i32_0 : i32, i32
  }
  func.func @transform_6(%arg0: i32) -> (i32, i32) {
    %c0_i32 = arith.constant 0 : i32
    %c0_i32_0 = arith.constant 0 : i32
    %c0_i32_1 = arith.constant 0 : i32
    return %c0_i32, %c0_i32_0 : i32, i32
  }
  func.func @transform_7(%arg0: i32) -> (i32, i32) {
    %c0_i32 = arith.constant 0 : i32
    %c0_i32_0 = arith.constant 0 : i32
    %c0_i32_1 = arith.constant 0 : i32
    return %c0_i32, %c0_i32_0 : i32, i32
  }
  func.func @transform_8(%arg0: i32) -> (i32, i32) {
    %c0_i32 = arith.constant 0 : i32
    %c0_i32_0 = arith.constant 0 : i32
    return %c0_i32, %arg0 : i32, i32
  }
  func.func @transform_9(%arg0: i32) -> (i32, i32) {
    %c0_i32 = arith.constant 0 : i32
    %c0_i32_0 = arith.constant 0 : i32
    return %c0_i32, %arg0 : i32, i32
  }
}

</mosaic_0001>

<bundles_post_ra>
// kernel: tpu_custom_call.1
= control target key start
LH: loop header
LB: loop body
LE: loop exit
PB: predicated region body
PF: predicated region fallthrough
CT: control target
= control target key end

     0   :  { %15 = vsyncpa [#allocation3], 0  ;;  %s1959_s0 = inlined_call_operand.vmem [shape: f32[256,16], index: 0, kind: input, shape index: {}]   ;;  %s1960_s1 = inlined_call_operand.vmem [shape: f32[4,256], index: 1, kind: input, shape index: {}]   ;;  %s1961_s2 = inlined_call_operand.vmem [shape: bf16[128,16], index: 2, kind: input, shape index: {}]   ;;  %s1962_s3 = inlined_call_operand.vmem [shape: f32[128,1], index: 3, kind: input, shape index: {}]   ;;  %s1963_s4 = inlined_call_operand.vmem [shape: bf16[128,128], index: 4, kind: input, shape index: {}]   ;;  %s1964_s5 = inlined_call_operand.vmem [shape: f32[128,1], index: 5, kind: input, shape index: {}]   ;;  %s1965_s6 = inlined_call_operand.vmem [shape: bf16[4,128], index: 6, kind: input, shape index: {}]   ;;  %s1966_s7 = inlined_call_operand.vmem [shape: f32[4,1], index: 7, kind: input, shape index: {}]   ;;  %s1967_s8 = inlined_call_operand.hbm [shape: f32[1,256], index: 8, kind: output, shape index: {0}]   ;;  %s1968_s9 = inlined_call_operand.hbm [shape: s32[1,256], index: 9, kind: output, shape index: {1}]  }
   0x1   :  { %17 = vsyncpa [#allocation3 + $0x1], 0 }
   0x2   :  { %18 = vsyncpa [#allocation5], 0 }
   0x3   :  { %20 = vsyncpa [#allocation5 + $0x1], 0  ;;  %s1602_s30 = smov 0   ;;  %s1604_s10 = smov 0  }
   0x4   :  { %s1606_s11 = smov 0   ;;  %s1608_s12 = smov 0  }
   0x5 LB: > { %s1623_s13 = sadd.s32 4294967295, %s1545_s12   ;;  %s1214_s14 = sadd.s32 4294967294, %s1545_s12   ;;  %s1545_s12 = sphi %s1608_s12, %s1974_s12   ;;  %s1541_s11 = sphi %s1606_s11, %s1973_s11   ;;  %s1537_s10 = sphi %s1604_s10, %s1972_s10   ;;  %s1533_s30 = sphi %s1602_s30, %s1971_s30  }
   0x6   : > { %s1627_s15 = sadd.s32 1, %s1545_s12   ;;  %s211_s16 = sadd.s32 1, %s1541_s11 }
   0x7   : > { %s208_s17 = ssub.s32 %s1545_s12, %s1627_s15  ;;  %p221_p0 = scmp.ne.s32.totalorder %s1541_s11, %s1537_s10 }
   0x8   : > { %p209_p1 = scmp.eq.s32.totalorder %s208_s17, 0  ;;  %p222_p2 = scmp.eq.s32.totalorder %s1623_s13, 1 }
   0x9   : > { %p227_p3 = scmp.ne.s32.totalorder %s1537_s10, %s1533_s30  ;;  %p228_p4 = scmp.eq.s32.totalorder %s1214_s14, 1 }
   0xa   : > { %s1638_s18 = scalar_select %p209_p1, %s1541_s11, %s211_s16  }
   0xb   : > { %p1640_p5 = por %p222_p2, %p221_p0  ;;  %p1644_p6 = por %p228_p4, %p227_p3 }
   0xc   : > { %p1217_p7 = scmp.ge.s32.totalorder %s1545_s12, 1  ;;  %p306_p8 = scmp.lt.s32.totalorder %s1545_s12, 3 }
   0xe   : > { %p307_p9 = pnand %p1217_p7, %p306_p8 }
   0xf   : > { %s1651_s21 = sshll.u32 (!%p307_p9), %s1623_s13, 4  ;;  %v1431_v0 = vld [vmem:[%s1961_s2] sm:$0xff] (!%p307_p9)   ;;  %vm536_vm0 = vcmask (!%p307_p9), 130048   ;;  %v1547_v1 = vmov (!%p307_p9), 0   ;;  %v401_v8 = vld [vmem:[%s1962_s3 + $0x8] sm:$0xff] (!%p307_p9)  ;;  %v402_v13 = vld [vmem:[%s1962_s3 + $0x10] sm:$0xff] (!%p307_p9) }
  0x10   : > { %310 = sbr.rel (%p307_p9) target bundleno = 908 (0x38c), region = 52  ;;  %p350_p10 = scmp.lt.s32.totalorder (!%p307_p9), %s1651_s21, 31  ;;  %1306 = vmatprep.mubr.msk.bf16.mxu0 (!%p307_p9), %vm536_vm0, %v1431_v0  ;;  %1429 = vset.pattern.permute.xlu0 (!%p307_p9), %v1547_v1  ;;  %v400_v2 = vld [vmem:[%s1962_s3] sm:$0xff] (!%p307_p9)  ;;  %v403_v17 = vld [vmem:[%s1962_s3 + $0x18] sm:$0xff] (!%p307_p9)  ;;  %v406_v18 = vld [vmem:[%s1962_s3 + $0x30] sm:$0xff] (!%p307_p9)  ;;  %vm1549_vm1 = vmmov (!%p307_p9), 0  }
  0x11   : > { %1430 = vset.pattern.permute.xlu1 (!%p307_p9), %v1547_v1  ;;  %418 = vperm.xlu0 (!%p307_p9), %1429, %v400_v2   ;;  %v404_v14 = vld [vmem:[%s1962_s3 + $0x20] sm:$0xff] (!%p307_p9)  ;;  %v405_v19 = vld [vmem:[%s1962_s3 + $0x28] sm:$0xff] (!%p307_p9)  ;;  %v407_v25 = vld [vmem:[%s1962_s3 + $0x38] sm:$0xff] (!%p307_p9)  ;;  %p355_p11 = scmp.lt.s32.totalorder (!%p307_p9), %s1623_s13, 1  ;;  %vm1034_vm2 = vcmask (!%p307_p9), 1043456   ;;  %s1882_s14 = scalar_lea.hbm (!%p307_p9), %s1968_s9, %s1651_s21 }
  0x12   : > { %428 = vperm.xlu1 (!%p307_p9), %1430, %v402_v13   ;;  %v408_v22 = vld [vmem:[%s1962_s3 + $0x40] sm:$0xff] (!%p307_p9)  ;;  %v410_v26 = vld [vmem:[%s1962_s3 + $0x50] sm:$0xff] (!%p307_p9)  ;;  %v409_v27 = vld [vmem:[%s1962_s3 + $0x48] sm:$0xff] (!%p307_p9) }
  0x13   : > { %v412_v30 = vld [vmem:[%s1962_s3 + $0x60] sm:$0xff] (!%p307_p9)  ;;  %v411_v33 = vld [vmem:[%s1962_s3 + $0x58] sm:$0xff] (!%p307_p9)  ;;  %v414_v34 = vld [vmem:[%s1962_s3 + $0x70] sm:$0xff] (!%p307_p9) }
  0x14   : > { %v413_v35 = vld [vmem:[%s1962_s3 + $0x68] sm:$0xff] (!%p307_p9)  ;;  %v722_v38 = vld [vmem:[%s1964_s5] sm:$0xff] (!%p307_p9)  ;;  %v415_v41 = vld [vmem:[%s1962_s3 + $0x78] sm:$0xff] (!%p307_p9) }
  0x15   : > { %423 = vperm.xlu0 (!%p307_p9), %1429, %v401_v8   ;;  %v724_v42 = vld [vmem:[%s1964_s5 + $0x10] sm:$0xff] (!%p307_p9)  ;;  %v723_v43 = vld [vmem:[%s1964_s5 + $0x8] sm:$0xff] (!%p307_p9)  ;;  %v726_v46 = vld [vmem:[%s1964_s5 + $0x20] sm:$0xff] (!%p307_p9) }
  0x16   : > { %433 = vperm.xlu1 (!%p307_p9), %1430, %v403_v17   ;;  %v725_v49 = vld [vmem:[%s1964_s5 + $0x18] sm:$0xff] (!%p307_p9)  ;;  %v728_v50 = vld [vmem:[%s1964_s5 + $0x30] sm:$0xff] (!%p307_p9)  ;;  %v727_v51 = vld [vmem:[%s1964_s5 + $0x28] sm:$0xff] (!%p307_p9) }
  0x17   : > { %s351_s24 = scalar_select %p350_p10, %s1651_s21, 31  ;;  %v730_v54 = vld [vmem:[%s1964_s5 + $0x40] sm:$0xff]  ;;  %v729_v57 = vld [vmem:[%s1964_s5 + $0x38] sm:$0xff]  ;;  %v732_v58 = vld [vmem:[%s1964_s5 + $0x50] sm:$0xff] }
  0x18   : > { %v731_v59 = vld [vmem:[%s1964_s5 + $0x48] sm:$0xff]  ;;  %v734_v60 = vld [vmem:[%s1964_s5 + $0x60] sm:$0xff]  ;;  %v733_v62 = vld [vmem:[%s1964_s5 + $0x58] sm:$0xff]  ;;  %s1976_s13 = smov (!%p355_p11, %s1623_s13), 1 }
  0x19   : > { %s1219_s25 = sshll.u32 %s351_s24, 3  ;;  %438 = vperm.xlu0 %1429, %v404_v14   ;;  %v736_v63 = vld [vmem:[%s1964_s5 + $0x70] sm:$0xff]  ;;  %v735_v0 = vld [vmem:[%s1964_s5 + $0x68] sm:$0xff]  ;;  %v988_v1 = vld [vmem:[%s1966_s7] sm:$0xf]  ;;  %s1220_s17 = sshll.u32 %s1976_s13, 2 }
  0x1a   : > { %s1662_s28 = scalar_lea.vmem %s1959_s0, %s1219_s25  ;;  %443 = vperm.xlu1 %1430, %v405_v19   ;;  %v1432_v2 = vld [vmem:[%s1961_s2 + $0x8] sm:$0xff]   ;;  %v1437_v8 = vld [vmem:[%s1961_s2 + $0x30] sm:$0xff]   ;;  %s358_s24 = scalar_lea.vmem %s1960_s1, %s1220_s17 }
  0x1b   : > { %v360_v3 = vld [vmem:[%s1662_s28] sm:$0xff]  ;;  %v361_v4 = vld [vmem:[%s1662_s28 + $0x8] sm:$0xff]  ;;  %v362_v5 = vld [vmem:[%s1662_s28 + $0x10] sm:$0xff]  ;;  %s1874_s13 = sand.u32 1, %s1537_s10   ;;  %s1550_s17 = smov [#allocation4]  }
  0x1c   : > { %v376_v6 = vpack.c.bf16 %v361_v4, %v360_v3  ;;  %v363_v7 = vld [vmem:[%s1662_s28 + $0x18] sm:$0xff]  ;;  %v364_v11 = vld [vmem:[%s1662_s28 + $0x20] sm:$0xff]  ;;  %v365_v12 = vld [vmem:[%s1662_s28 + $0x28] sm:$0xff]  ;;  %s348_s25 = scalar_lea.vmem [#allocation4], %s1874_s13  ;;  %s1455_s22 = sshll.u32 %s1550_s17, 4  ;;  %s1456_s22 = int_to_ptr.vmem [resolvable:$false] %s1455_s22 }
  0x1d   : > { %v377_v9 = vpack.c.bf16 %v363_v7, %v362_v5  ;;  %v378_v16 = vpack.c.bf16 %v365_v12, %v364_v11  ;;  %448 = vperm.xlu0 %1429, %v406_v18   ;;  %v366_v20 = vld [vmem:[%s1662_s28 + $0x30] sm:$0xff]  ;;  %v367_v21 = vld [vmem:[%s1662_s28 + $0x38] sm:$0xff]  ;;  %v368_v28 = vld [vmem:[%s1662_s28 + $0x40] sm:$0xff]  ;;  %s1119_s26 = sshll.u32 %s348_s25, 4  ;;  %s1457_s23 = scalar_lea.vmem %s1456_s22, 32  ;;  %s1884_s26 = int_to_ptr.vmem [resolvable:$true] %s1119_s26 }
  0x1e   : > { %1374 = vmatprep.subr.msk.bf16.mxu0 %vm536_vm0, %v376_v6  ;;  %v562_v10 = vsel %vm536_vm0, %v376_v6, 0  ;;  %v379_v24 = vpack.c.bf16 %v367_v21, %v366_v20  ;;  %v369_v29 = vld [vmem:[%s1662_s28 + $0x48] sm:$0xff]  ;;  %453 = vperm.xlu1 %1430, %v407_v25   ;;  %v370_v36 = vld [vmem:[%s1662_s28 + $0x50] sm:$0xff]  ;;  %v371_v37 = vld [vmem:[%s1662_s28 + $0x58] sm:$0xff]  ;;  %s1451_s16 = scalar_lea.vmem %s1884_s26, 16  ;;  %p1458_p1 = scmp.lt.s32.totalorder %s1884_s26, %s1456_s22 }
  0x1f   : > { %1291 = vmatpush3.bf16.xpose.msra.mxu0 %v562_v10  ;;  %v565_v15 = vsel %vm536_vm0, %v377_v9, 0  ;;  %v568_v23 = vsel %vm536_vm0, %v378_v16, 0  ;;  %v380_v32 = vpack.c.bf16 %v369_v29, %v368_v28  ;;  %v381_v40 = vpack.c.bf16 %v371_v37, %v370_v36  ;;  %v372_v44 = vld [vmem:[%s1662_s28 + $0x60] sm:$0xff]  ;;  %v373_v45 = vld [vmem:[%s1662_s28 + $0x68] sm:$0xff]  ;;  %v374_v52 = vld [vmem:[%s1662_s28 + $0x70] sm:$0xff]  ;;  %p1452_p12 = scmp.ne.s32.totalorder %s1884_s26, %s1451_s16  ;;  %p1459_p2 = scmp.lt.s32.totalorder %s1457_s23, %s1451_s16 }
  0x20   : > { %1375 = vmatprep.subr.msk.bf16.mxu0 %vm536_vm0, %v377_v9  ;;  %v571_v31 = vsel %vm536_vm0, %v379_v24, 0  ;;  %v382_v48 = vpack.c.bf16 %v373_v45, %v372_v44  ;;  %v375_v53 = vld [vmem:[%s1662_s28 + $0x78] sm:$0xff]  ;;  %v1433_v3 = vld [vmem:[%s1961_s2 + $0x10] sm:$0xff]   ;;  %v1435_v6 = vld [vmem:[%s1961_s2 + $0x20] sm:$0xff]   ;;  %s1094_s28 = scalar_lea.sflag [#allocation5], %s1874_s13 }
  0x21   : > { %458 = vperm.xlu0 %1429, %v408_v22   ;;  %v574_v39 = vsel %vm536_vm0, %v380_v32, 0  ;;  %v577_v47 = vsel %vm536_vm0, %v381_v40, 0  ;;  %v383_v56 = vpack.c.bf16 %v375_v53, %v374_v52  ;;  %v737_v4 = vld [vmem:[%s1964_s5 + $0x78] sm:$0xff]  ;;  %v1436_v7 = vld [vmem:[%s1961_s2 + $0x28] sm:$0xff]   ;;  %v1439_v10 = vld [vmem:[%s1963_s4] sm:$0xff]   ;;  %p1453_p13 = pnand %p1452_p12, %p1640_p5  ;;  %p1460_p3 = por %p1459_p2, %p1458_p1 }
  0x22   : > { %463 = vperm.xlu1 %1430, %v409_v27   ;;  %v580_v55 = vsel %vm536_vm0, %v382_v48, 0  ;;  %v1434_v5 = vld [vmem:[%s1961_s2 + $0x18] sm:$0xff]   ;;  %1338 = vmatprep.mubr.bf16.mxu1 %v1439_v10 }
  0x23   : > { %v583_v61 = vsel %vm536_vm0, %v383_v56, 0  ;;  %v1438_v9 = vld [vmem:[%s1961_s2 + $0x38] sm:$0xff]   ;;  %p1454_p0 = pneg %p1453_p13 }
  0x25   : > { %468 = vperm.xlu0 %1429, %v410_v26   ;;  %p1461_p4 = pnand %p1460_p3, %p1454_p0 }
  0x26   : > { %473 = vperm.xlu1 %1430, %v411_v33  }
  0x27   : > { %1293 = vmatpush3.bf16.xpose.msra.mxu0 %v565_v15 }
  0x28   : > { %1376 = vmatprep.subr.msk.bf16.mxu0 %vm536_vm0, %v378_v16 }
  0x29   : > { %478 = vperm.xlu0 %1429, %v412_v30  }
  0x2a   : > { %483 = vperm.xlu1 %1430, %v413_v35  }
  0x2d   : > { %488 = vperm.xlu0 %1429, %v414_v34  }
  0x2e   : > { %493 = vperm.xlu1 %1430, %v415_v41  }
  0x2f   : > { %1295 = vmatpush3.bf16.xpose.msra.mxu0 %v568_v23 }
  0x30   : > { %1377 = vmatprep.subr.msk.bf16.mxu0 %vm536_vm0, %v379_v24 }
  0x31   : > { %740 = vperm.xlu0 %1429, %v722_v38  }
  0x32   : > { %745 = vperm.xlu1 %1430, %v723_v43  }
  0x35   : > { %750 = vperm.xlu0 %1429, %v724_v42  }
  0x36   : > { %755 = vperm.xlu1 %1430, %v725_v49  }
  0x37   : > { %1297 = vmatpush3.bf16.xpose.msra.mxu0 %v571_v31 }
  0x38   : > { %1378 = vmatprep.subr.msk.bf16.mxu0 %vm536_vm0, %v380_v32 }
  0x39   : > { %760 = vperm.xlu0 %1429, %v726_v46  }
  0x3a   : > { %765 = vperm.xlu1 %1430, %v727_v51  }
  0x3d   : > { %770 = vperm.xlu0 %1429, %v728_v50  }
  0x3e   : > { %775 = vperm.xlu1 %1430, %v729_v57  }
  0x3f   : > { %1299 = vmatpush3.bf16.xpose.msra.mxu0 %v574_v39 }
  0x40   : > { %1379 = vmatprep.subr.msk.bf16.mxu0 %vm536_vm0, %v381_v40 }
  0x41   : > { %780 = vperm.xlu0 %1429, %v730_v54  }
  0x42   : > { %785 = vperm.xlu1 %1430, %v731_v59  }
  0x45   : > { %790 = vperm.xlu0 %1429, %v732_v58  }
  0x46   : > { %795 = vperm.xlu1 %1430, %v733_v62  }
  0x47   : > { %1301 = vmatpush3.bf16.xpose.msra.mxu0 %v577_v47 }
  0x48   : > { %1380 = vmatprep.subr.msk.bf16.mxu0 %vm536_vm0, %v382_v48 }
  0x49   : > { %800 = vperm.xlu0 %1429, %v734_v60  }
  0x4a   : > { %805 = vperm.xlu1 %1430, %v735_v0  }
  0x4d   : > { %810 = vperm.xlu0 %1429, %v736_v63  }
  0x4e   : > { %815 = vperm.xlu1 %1430, %v737_v4  }
  0x4f   : > { %1303 = vmatpush3.bf16.xpose.msra.mxu0 %v580_v55 }
  0x50   : > { %1381 = vmatprep.subr.msk.bf16.mxu0 %vm536_vm0, %v383_v56 }
  0x51   : > { %991 = vperm.xlu0 %1429, %v988_v1  }
  0x57   : > { %1305 = vmatpush3.bf16.xpose.msra.mxu0 %v583_v61 }
  0x5e   : > { %1307 = vmatmul.mubr.msk.bf16.vlgmr.msra.gmra.mrb[0].mxu0 %vm536_vm0, %v1432_v2 }
  0x5f   : > { %1310 = vmatprep.mubr.msk.bf16.mxu0 %vm536_vm0, %v1433_v3 }
  0x66   : > { %1311 = vmatmul.mubr.msk.bf16.gmra.mrb[4].mxu0 %vm536_vm0, %v1434_v5 }
  0x67   : > { %1314 = vmatprep.mubr.msk.bf16.mxu0 %vm536_vm0, %v1435_v6 }
  0x6e   : > { %1315 = vmatmul.mubr.msk.bf16.gmra.mrb[8].mxu0 %vm536_vm0, %v1436_v7 }
  0x6f   : > { %1318 = vmatprep.mubr.msk.bf16.mxu0 %vm536_vm0, %v1437_v8 }
  0x76   : > { %1319 = vmatmul.mubr.msk.bf16.gmra.mrb[12].mxu0 %vm536_vm0, %v1438_v9 }
  0x90   : > { %v419_v11 = vpop.permute.xlu0 %418 }
  0x91   : > { %v429_v12 = vpop.permute.xlu1 %428 }
  0x94   : > { %v424_v13 = vpop.permute.xlu0 %423 }
  0x95   : > { %v434_v14 = vpop.permute.xlu1 %433 }
  0x98   : > { %v439_v15 = vpop.permute.xlu0 %438 }
  0x99   : > { %v444_v16 = vpop.permute.xlu1 %443 }
  0x9c   : > { %v449_v17 = vpop.permute.xlu0 %448 }
  0x9d   : > { %v454_v21 = vpop.permute.xlu1 %453 }
  0xa0   : > { %v459_v29 = vpop.permute.xlu0 %458 }
  0xa1   : > { %v464_v33 = vpop.permute.xlu1 %463 }
  0xa4   : > { %v469_v42 = vpop.permute.xlu0 %468 }
  0xa5   : > { %v474_v46 = vpop.permute.xlu1 %473 }
  0xa8   : > { %v479_v54 = vpop.permute.xlu0 %478 }
  0xa9   : > { %v484_v59 = vpop.permute.xlu1 %483 }
  0xac   : > { %v489_v2 = vpop.permute.xlu0 %488 }
  0xad   : > { %v494_v7 = vpop.permute.xlu1 %493 }
 0x131   : > { %v1308_v18 = vpop.f32.mrb[0].mxu0 }
 0x132   : > { %v628_v19 = vadd.f32 %v1308_v18, %v429_v12  ;;  %v619_v20 = vpop.f32.mrb[1].mxu0 }
 0x133   : > { %v620_v22 = vadd.f32 %v619_v20, %v419_v11  ;;  %v1309_v23 = vpop.f32.mrb[2].mxu0  ;;  %v1441_v20 = vld [vmem:[%s1963_s4 + $0x10] sm:$0xff]  }
 0x134   : > { %v631_v24 = vadd.f32 %v1309_v23, %v434_v14  ;;  %v622_v25 = vpop.f32.mrb[3].mxu0  ;;  %v684_v27 = vmax.f32 %v628_v19, 0.0  ;;  %v1440_v19 = vld [vmem:[%s1963_s4 + $0x8] sm:$0xff]  }
 0x135   : > { %v623_v26 = vadd.f32 %v622_v25, %v424_v13  ;;  %v682_v30 = vmax.f32 %v620_v22, 0.0  ;;  %v1443_v22 = vld [vmem:[%s1963_s4 + $0x20] sm:$0xff]   ;;  %v1444_v23 = vld [vmem:[%s1963_s4 + $0x28] sm:$0xff]   ;;  %v1446_v25 = vld [vmem:[%s1963_s4 + $0x38] sm:$0xff]  }
 0x136   : > { %v685_v28 = vmax.f32 %v631_v24, 0.0  ;;  %v1445_v24 = vld [vmem:[%s1963_s4 + $0x30] sm:$0xff]  }
 0x137   : > { %v683_v31 = vmax.f32 %v623_v26, 0.0  ;;  %v1548_v26 = vmov 0.0  }
 0x138   : > { %v699_v32 = vpack.c.bf16 %v685_v28, %v684_v27  ;;  %v741_v27 = vpop.permute.xlu0 %740  ;;  %v746_v28 = vpop.permute.xlu1 %745 }
 0x139   : > { %v1312_v34 = vpop.f32.mrb[4].mxu0  ;;  %v698_v35 = vpack.c.bf16 %v683_v31, %v682_v30 }
 0x13a   : > { %v644_v36 = vadd.f32 %v1312_v34, %v449_v17  ;;  %v635_v37 = vpop.f32.mrb[5].mxu0 }
 0x13b   : > { %v636_v38 = vadd.f32 %v635_v37, %v439_v15  ;;  %v1313_v39 = vpop.f32.mrb[6].mxu0  ;;  %1322 = vmatprep.subr.bf16.mxu1 %v698_v35 }
 0x13c   : > { %v647_v40 = vadd.f32 %v1313_v39, %v454_v21  ;;  %v638_v41 = vpop.f32.mrb[7].mxu0  ;;  %1323 = vmatpush3.bf16.msra.mxu1 %v698_v35  ;;  %v688_v44 = vmax.f32 %v644_v36, 0.0  ;;  %v1442_v21 = vld [vmem:[%s1963_s4 + $0x18] sm:$0xff]   ;;  %v756_v30 = vpop.permute.xlu1 %755 }
 0x13d   : > { %v639_v43 = vadd.f32 %v638_v41, %v444_v16  ;;  %1324 = vmatprep.subr.bf16.mxu1 %v699_v32  ;;  %v686_v47 = vmax.f32 %v636_v38, 0.0 }
 0x13e   : > { %v689_v45 = vmax.f32 %v647_v40, 0.0 }
 0x13f   : > { %v687_v48 = vmax.f32 %v639_v43, 0.0 }
 0x140   : > { %v701_v49 = vpack.c.bf16 %v689_v45, %v688_v44  ;;  %1325 = vmatpush3.bf16.msra.mxu1 %v699_v32  ;;  %v766_v32 = vpop.permute.xlu1 %765 }
 0x141   : > { %v700_v50 = vpack.c.bf16 %v687_v48, %v686_v47  ;;  %v1316_v51 = vpop.f32.mrb[8].mxu0 }
 0x142   : > { %v660_v52 = vadd.f32 %v1316_v51, %v469_v42  ;;  %v651_v53 = vpop.f32.mrb[9].mxu0 }
 0x143   : > { %v652_v55 = vadd.f32 %v651_v53, %v459_v29  ;;  %v1317_v56 = vpop.f32.mrb[10].mxu0  ;;  %1326 = vmatprep.subr.bf16.mxu1 %v700_v50  ;;  %v751_v29 = vpop.permute.xlu0 %750 }
 0x144   : > { %v663_v57 = vadd.f32 %v1317_v56, %v474_v46  ;;  %v654_v58 = vpop.f32.mrb[11].mxu0  ;;  %1327 = vmatpush3.bf16.msra.mxu1 %v700_v50  ;;  %v692_v61 = vmax.f32 %v660_v52, 0.0  ;;  %v776_v37 = vpop.permute.xlu1 %775 }
 0x145   : > { %v655_v60 = vadd.f32 %v654_v58, %v464_v33  ;;  %1328 = vmatprep.subr.bf16.mxu1 %v701_v49  ;;  %v690_v63 = vmax.f32 %v652_v55, 0.0 }
 0x146   : > { %v693_v62 = vmax.f32 %v663_v57, 0.0 }
 0x147   : > { %v691_v0 = vmax.f32 %v655_v60, 0.0  ;;  %v761_v31 = vpop.permute.xlu0 %760 }
 0x148   : > { %v703_v1 = vpack.c.bf16 %v693_v62, %v692_v61  ;;  %1329 = vmatpush3.bf16.msra.mxu1 %v701_v49  ;;  %v786_v49 = vpop.permute.xlu1 %785 }
 0x149   : > { %v702_v3 = vpack.c.bf16 %v691_v0, %v690_v63  ;;  %v1320_v4 = vpop.f32.mrb[12].mxu0 }
 0x14a   : > { %v676_v5 = vadd.f32 %v1320_v4, %v489_v2  ;;  %v667_v6 = vpop.f32.mrb[13].mxu0 }
 0x14b   : > { %v668_v8 = vadd.f32 %v667_v6, %v479_v54  ;;  %v1321_v9 = vpop.f32.mrb[14].mxu0  ;;  %1330 = vmatprep.subr.bf16.mxu1 %v702_v3  ;;  %v771_v33 = vpop.permute.xlu0 %770 }
 0x14c   : > { %v679_v10 = vadd.f32 %v1321_v9, %v494_v7  ;;  %v670_v11 = vpop.f32.mrb[15].mxu0  ;;  %1331 = vmatpush3.bf16.msra.mxu1 %v702_v3  ;;  %v696_v13 = vmax.f32 %v676_v5, 0.0  ;;  %v796_v62 = vpop.permute.xlu1 %795 }
 0x14d   : > { %v671_v12 = vadd.f32 %v670_v11, %v484_v59  ;;  %1332 = vmatprep.subr.bf16.mxu1 %v703_v1  ;;  %v694_v15 = vmax.f32 %v668_v8, 0.0 }
 0x14e   : > { %v697_v14 = vmax.f32 %v679_v10, 0.0 }
 0x14f   : > { %v695_v16 = vmax.f32 %v671_v12, 0.0  ;;  %v781_v45 = vpop.permute.xlu0 %780 }
 0x150   : > { %v705_v17 = vpack.c.bf16 %v697_v14, %v696_v13  ;;  %1333 = vmatpush3.bf16.msra.mxu1 %v703_v1  ;;  %v806_v11 = vpop.permute.xlu1 %805 }
 0x151   : > { %v704_v18 = vpack.c.bf16 %v695_v16, %v694_v15 }
 0x153   : > { %1334 = vmatprep.subr.bf16.mxu1 %v704_v18  ;;  %v791_v58 = vpop.permute.xlu0 %790 }
 0x154   : > { %1335 = vmatpush3.bf16.msra.mxu1 %v704_v18 }
 0x155   : > { %1336 = vmatprep.subr.bf16.mxu1 %v705_v17 }
 0x157   : > { %v801_v6 = vpop.permute.xlu0 %800 }
 0x158   : > { %1337 = vmatpush3.bf16.msra.mxu1 %v705_v17 }
 0x159   : > { %1354 = vmatprep.subr.bf16.mxu1 %v1548_v26 }
 0x15b   : > { %1339 = vmatmul.mubr.bf16.vlgmr.msra.gmra.mrb[0].mxu1 %v1440_v19  ;;  %v811_v18 = vpop.permute.xlu0 %810 }
 0x15c   : > { %1342 = vmatprep.mubr.bf16.mxu1 %v1441_v20 }
 0x163   : > { %1343 = vmatmul.mubr.bf16.gmra.mrb[4].mxu1 %v1442_v21 }
 0x164   : > { %1346 = vmatprep.mubr.bf16.mxu1 %v1443_v22 }
 0x16b   : > { %1347 = vmatmul.mubr.bf16.gmra.mrb[8].mxu1 %v1444_v23  ;;  %v816_v23 = vpop.permute.xlu1 %815 }
 0x16c   : > { %1350 = vmatprep.mubr.bf16.mxu1 %v1445_v24 }
 0x173   : > { %1351 = vmatmul.mubr.bf16.gmra.mrb[12].mxu1 %v1446_v25 }
 0x174   : > { %1370 = vmatprep.mubr.msk.bf16.mxu1 %vm1549_vm1, %v1548_v26 }
 0x22e   : > { %v1340_v34 = vpop.f32.mrb[0].mxu1 }
 0x22f   : > { %v909_v35 = vadd.f32 %v1340_v34, %v751_v29  ;;  %v900_v36 = vpop.f32.mrb[1].mxu1 }
 0x230   : > { %v901_v38 = vadd.f32 %v900_v36, %v741_v27  ;;  %v1341_v39 = vpop.f32.mrb[2].mxu1  ;;  %v987_v36 = vld [vmem:[%s1965_s6] sm:$0x3] }
 0x231   : > { %v912_v40 = vadd.f32 %v1341_v39, %v756_v30  ;;  %v903_v41 = vpop.f32.mrb[3].mxu1  ;;  %v965_v43 = vmax.f32 %v909_v35, 0.0  ;;  %v1055_v39 = vld [vmem:[%s358_s24] sm:$0xf] }
 0x232   : > { %v904_v42 = vadd.f32 %v903_v41, %v746_v28  ;;  %v963_v46 = vmax.f32 %v901_v38, 0.0 }
 0x233   : > { %v966_v44 = vmax.f32 %v912_v40, 0.0 }
 0x234   : > { %v964_v47 = vmax.f32 %v904_v42, 0.0 }
 0x235   : > { %v980_v48 = vpack.c.bf16 %v966_v44, %v965_v43 }
 0x236   : > { %v979_v50 = vpack.c.bf16 %v964_v47, %v963_v46  ;;  %v1344_v51 = vpop.f32.mrb[4].mxu1 }
 0x237   : > { %v925_v52 = vadd.f32 %v1344_v51, %v771_v33  ;;  %v916_v53 = vpop.f32.mrb[5].mxu1 }
 0x238   : > { %v917_v54 = vadd.f32 %v916_v53, %v761_v31  ;;  %v1345_v55 = vpop.f32.mrb[6].mxu1  ;;  %1355 = vmatpush3.bf16.msra.mxu1 %v979_v50  ;;  %v1064_v53 = vlaneseq }
 0x239   : > { %v928_v56 = vadd.f32 %v1345_v55, %v776_v37  ;;  %v919_v57 = vpop.f32.mrb[7].mxu1  ;;  %1356 = vmatprep.subr.bf16.mxu1 %v1548_v26  ;;  %v969_v60 = vmax.f32 %v925_v52, 0.0  ;;  %v992_v37 = vpop.permute.xlu0 %991 }
 0x23a   : > { %v920_v59 = vadd.f32 %v919_v57, %v766_v32  ;;  %v967_v63 = vmax.f32 %v917_v54, 0.0 }
 0x23b   : > { %v970_v61 = vmax.f32 %v928_v56, 0.0 }
 0x23c   : > { %v968_v0 = vmax.f32 %v920_v59, 0.0  ;;  %1357 = vmatpush3.bf16.msra.mxu1 %v980_v48 }
 0x23d   : > { %v982_v1 = vpack.c.bf16 %v970_v61, %v969_v60  ;;  %1358 = vmatprep.subr.bf16.mxu1 %v1548_v26 }
 0x23e   : > { %v981_v2 = vpack.c.bf16 %v968_v0, %v967_v63  ;;  %v1348_v3 = vpop.f32.mrb[8].mxu1 }
 0x23f   : > { %v941_v4 = vadd.f32 %v1348_v3, %v791_v58  ;;  %v932_v5 = vpop.f32.mrb[9].mxu1  ;;  %v1866_v58 = vshrl.u32 %v1064_v53, 7 }
 0x240   : > { %v933_v7 = vadd.f32 %v932_v5, %v781_v45  ;;  %v1349_v8 = vpop.f32.mrb[10].mxu1  ;;  %1359 = vmatpush3.bf16.msra.mxu1 %v981_v2 }
 0x241   : > { %v944_v9 = vadd.f32 %v1349_v8, %v796_v62  ;;  %v935_v10 = vpop.f32.mrb[11].mxu1  ;;  %1360 = vmatprep.subr.bf16.mxu1 %v1548_v26  ;;  %v973_v13 = vmax.f32 %v941_v4, 0.0 }
 0x242   : > { %v936_v12 = vadd.f32 %v935_v10, %v786_v49  ;;  %v971_v15 = vmax.f32 %v933_v7, 0.0 }
 0x243   : > { %v974_v14 = vmax.f32 %v944_v9, 0.0 }
 0x244   : > { %v972_v16 = vmax.f32 %v936_v12, 0.0  ;;  %1361 = vmatpush3.bf16.msra.mxu1 %v982_v1 }
 0x245   : > { %v984_v17 = vpack.c.bf16 %v974_v14, %v973_v13  ;;  %1362 = vmatprep.subr.bf16.mxu1 %v1548_v26 }
 0x246   : > { %v983_v19 = vpack.c.bf16 %v972_v16, %v971_v15  ;;  %v1352_v20 = vpop.f32.mrb[12].mxu1 }
 0x247   : > { %v957_v21 = vadd.f32 %v1352_v20, %v811_v18  ;;  %v948_v22 = vpop.f32.mrb[13].mxu1 }
 0x248   : > { %v949_v24 = vadd.f32 %v948_v22, %v801_v6  ;;  %v1353_v25 = vpop.f32.mrb[14].mxu1  ;;  %1363 = vmatpush3.bf16.msra.mxu1 %v983_v19 }
 0x249   : > { %v960_v27 = vadd.f32 %v1353_v25, %v816_v23  ;;  %v951_v28 = vpop.f32.mrb[15].mxu1  ;;  %1364 = vmatprep.subr.bf16.mxu1 %v1548_v26  ;;  %v977_v30 = vmax.f32 %v957_v21, 0.0 }
 0x24a   : > { %v952_v29 = vadd.f32 %v951_v28, %v806_v11  ;;  %v975_v32 = vmax.f32 %v949_v24, 0.0 }
 0x24b   : > { %v978_v31 = vmax.f32 %v960_v27, 0.0 }
 0x24c   : > { %v976_v33 = vmax.f32 %v952_v29, 0.0  ;;  %1365 = vmatpush3.bf16.msra.mxu1 %v984_v17 }
 0x24d   : > { %v986_v34 = vpack.c.bf16 %v978_v31, %v977_v30  ;;  %1366 = vmatprep.subr.bf16.mxu1 %v1548_v26 }
 0x24e   : > { %v985_v35 = vpack.c.bf16 %v976_v33, %v975_v32 }
 0x250   : > { %1367 = vmatpush3.bf16.msra.mxu1 %v985_v35 }
 0x251   : > { %1368 = vmatprep.subr.bf16.mxu1 %v1548_v26 }
 0x254   : > { %1369 = vmatpush3.bf16.msra.mxu1 %v986_v34 }
 0x257   : > { %1371 = vmatmul.mubr.bf16.vlgmr.msra.gmra.mrb[16].mxu1 %v987_v36 }
 0x32a   : > { %v1028_v38 = vpop.f32.mrb[16].mxu1 }
 0x32b   : > { %v1029_v40 = vadd.f32 %v1028_v38, %v992_v37  ;;  %v1372_v41 = vpop.f32.mrb[17].mxu1 }
 0x32c   : > { %v1031_v26 = vpop.f32.mrb[18].mxu1 }
 0x32d   : > { %v1035_v42 = vsel %vm1034_vm2, %v1029_v40, -inf  ;;  %v1056_v43 = vadd.f32 %v1055_v39, %v1029_v40  ;;  %v1373_v44 = vpop.f32.mrb[19].mxu1 }
 0x32e   : > { %v1036_v45 = vrot.slane %v1035_v42, 4 }
 0x32f   : > { %v1057_v46 = vsel %vm1034_vm2, %v1056_v43, -inf }
 0x330   : > { %v1037_v47 = vmax.f32 %v1035_v42, %v1036_v45  ;;  %v1058_v48 = vrot.slane %v1057_v46, 4 }
 0x332   : > { %v1038_v49 = vrot.slane %v1037_v47, 2  ;;  %v1059_v50 = vmax.f32 %v1057_v46, %v1058_v48 }
 0x334   : > { %v1039_v51 = vmax.f32 %v1037_v47, %v1038_v49  ;;  %v1060_v52 = vrot.slane %v1059_v50, 2 }
 0x336   : > { %v1040_v54 = vrot.slane %v1039_v51, 1  ;;  %v1061_v55 = vmax.f32 %v1059_v50, %v1060_v52 }
 0x338   : > { %v1041_v56 = vmax.f32 %v1039_v51, %v1040_v54  ;;  %v1062_v57 = vrot.slane %v1061_v55, 1 }
 0x33a   : > { %v1868_v59 = vsub.f32 %v1029_v40, %v1041_v56  ;;  %v1063_v60 = vmax.f32 %v1061_v55, %v1062_v57 }
 0x33c   : > { %v1043_v61 = vmul.f32 1.442695, %v1868_v59  ;;  %vm1066_vm3 = vcmp.eq.f32.partialorder %v1056_v43, %v1063_v60 }
 0x33d   : > { %v1067_v62 = vsel %vm1066_vm3, %v1866_v58, 4 }
 0x33e   : > { %1447 = vpow2.f32 %v1043_v61  ;;  %v1068_v63 = vsel %vm1034_vm2, %v1067_v62, 2147483647 }
 0x33f   : > { %v1069_v0 = vrot.slane %v1068_v63, 4 }
 0x341   : > { %vm1070_vm4 = vcmp.lt.s32.totalorder %v1068_v63, %v1069_v0 }
 0x342   : > { %v1071_v1 = vsel %vm1070_vm4, %v1068_v63, %v1069_v0 }
 0x343   : > { %v1072_v2 = vrot.slane %v1071_v1, 2 }
 0x345   : > { %vm1073_vm5 = vcmp.lt.s32.totalorder %v1071_v1, %v1072_v2 }
 0x346   : > { %v1074_v3 = vsel %vm1073_vm5, %v1071_v1, %v1072_v2 }
 0x347   : > { %v1075_v4 = vrot.slane %v1074_v3, 1 }
 0x348   : > { %v1448_v5 = vpop.eup %1447 }
 0x349   : > { %v1045_v6 = vsel %vm1034_vm2, %v1448_v5, 0.0  ;;  %vm1076_vm6 = vcmp.lt.s32.totalorder %v1074_v3, %v1075_v4 }
 0x34a   : > { %v1046_v7 = vrot.slane %v1045_v6, 4  ;;  %v1077_v8 = vsel %vm1076_vm6, %v1074_v3, %v1075_v4 }
 0x34b   : > { %1088 = vst [vmem:[%s348_s25] sm:$0x1] %v1077_v8 }
 0x34c   : > { %v1047_v9 = vadd.f32 %v1046_v7, %v1045_v6 }
 0x34d   : > { %1464 = shalt.err (!%p1461_p4)
}
 0x34e   : > { %s1465_s24 = scalar_lea.hbm %s1882_s14, 16  ;;  %s1469_s29 = scalar_lea.hbm %s1968_s9, 32 }
 0x34f   : > { %p1466_p7 = scmp.ne.s32.totalorder %s1882_s14, %s1465_s24  ;;  %p1470_p10 = scmp.lt.u32.totalorder %s1882_s14, %s1968_s9 }
 0x350   : > { %p1471_p11 = scmp.lt.u32.totalorder %s1469_s29, %s1465_s24  ;;  %p1473_p13 = scmp.lt.u32.totalorder %s1465_s24, %s1882_s14 }
 0x351   : > { %p1467_p8 = pnand %p1466_p7, %p1640_p5 }
 0x352   : > { %p1472_p12 = por %p1471_p11, %p1470_p10 }
 0x353   : > { %p1468_p9 = pneg %p1467_p8 }
 0x354   : > { %p1474_p0 = por %p1473_p13, %p1472_p12 }
 0x356   : > { %p1475_p1 = pnand %p1474_p0, %p1468_p9 }
 0x358   : > { %1478 = shalt.err (!%p1475_p1)
}
 0x359   : > { %1383 = dma.vmem_to_hbm [thread:$0]  (%p1640_p5), %s1884_s26, 16, %s1882_s14, %s1094_s28   ;;  %v1048_v10 = vrot.slane %v1047_v9, 2  ;;  %vm1078_vm7 = vcmp.eq.s32.totalorder %v1866_v58, %v1077_v8 }
 0x35a   : > { %s342_s26 = scalar_lea.vmem [#allocation2], %s1874_s13  ;;  %s1916_s23 = scalar_lea.hbm %s1967_s8, %s1651_s21 }
 0x35b   : > { %v1049_v11 = vadd.f32 %v1048_v10, %v1047_v9  ;;  %s1106_s14 = sshll.u32 %s342_s26, 4  ;;  %s1090_s24 = scalar_lea.sflag [#allocation3], %s1874_s13  ;;  %s1918_s14 = int_to_ptr.vmem [resolvable:$true] %s1106_s14 }
 0x35c   : > { %s1479_s25 = scalar_lea.vmem %s1918_s14, 16  ;;  %s1551_s27 = smov [#allocation2]  }
 0x35d   : > { %v1050_v12 = vrot.slane %v1049_v11, 1  ;;  %p1480_p2 = scmp.ne.s32.totalorder %s1918_s14, %s1479_s25  ;;  %s1483_s29 = sshll.u32 %s1551_s27, 4  ;;  %s1484_s29 = int_to_ptr.vmem [resolvable:$false] %s1483_s29 }
 0x35e   : > { %s1485_s17 = scalar_lea.vmem %s1484_s29, 32  ;;  %p1486_p7 = scmp.lt.s32.totalorder %s1918_s14, %s1484_s29 }
 0x35f   : > { %v1051_v13 = vadd.f32 %v1050_v12, %v1049_v11  ;;  %p1481_p3 = pnand %p1480_p2, %p1640_p5  ;;  %p1487_p8 = scmp.lt.s32.totalorder %s1485_s17, %s1479_s25 }
 0x361   : > { %1449 = vlog2.f32 %v1051_v13  ;;  %p1482_p4 = pneg %p1481_p3  ;;  %p1488_p9 = por %p1487_p8, %p1486_p7 }
 0x363   : > { %p1489_p10 = pnand %p1488_p9, %p1482_p4 }
 0x36b   : > { %v1450_v14 = vpop.eup %1449 }
 0x36c   : > { %v1053_v15 = vmul.f32 0.6931472, %v1450_v14 }
 0x36e   : > { %v1054_v16 = vsub.f32 %v1868_v59, %v1053_v15 }
 0x370   : > { %v1079_v17 = vsel %vm1078_vm7, %v1054_v16, -inf }
 0x371   : > { %v1080_v18 = vsel %vm1034_vm2, %v1079_v17, -inf }
 0x372   : > { %v1081_v19 = vrot.slane %v1080_v18, 4 }
 0x374   : > { %v1082_v20 = vmax.f32 %v1080_v18, %v1081_v19 }
 0x376   : > { %v1083_v21 = vrot.slane %v1082_v20, 2 }
 0x378   : > { %v1084_v22 = vmax.f32 %v1082_v20, %v1083_v21 }
 0x37a   : > { %v1085_v23 = vrot.slane %v1084_v22, 1 }
 0x37c   : > { %v1086_v24 = vmax.f32 %v1084_v22, %v1085_v23 }
 0x37e   : > { %1087 = vst [vmem:[%s342_s26] sm:$0x1] %v1086_v24 }
 0x37f   : > { %1492 = shalt.err (!%p1489_p10)
}
 0x380   : > { %s1493_s21 = scalar_lea.hbm %s1916_s23, 16  ;;  %s1497_s26 = scalar_lea.hbm %s1967_s8, 32 }
 0x381   : > { %p1494_p11 = scmp.ne.s32.totalorder %s1916_s23, %s1493_s21  ;;  %p1498_p0 = scmp.lt.u32.totalorder %s1916_s23, %s1967_s8 }
 0x382   : > { %p1499_p1 = scmp.lt.u32.totalorder %s1497_s26, %s1493_s21  ;;  %p1501_p3 = scmp.lt.u32.totalorder %s1493_s21, %s1916_s23 }
 0x383   : > { %p1495_p12 = pnand %p1494_p11, %p1640_p5 }
 0x384   : > { %p1500_p2 = por %p1499_p1, %p1498_p0 }
 0x385   : > { %p1496_p13 = pneg %p1495_p12 }
 0x386   : > { %p1502_p4 = por %p1501_p3, %p1500_p2 }
 0x388   : > { %p1503_p7 = pnand %p1502_p4, %p1496_p13 }
 0x38a   : > { %1506 = shalt.err (!%p1503_p7)
}
 0x38b   : > { %1382 = dma.vmem_to_hbm [thread:$0]  (%p1640_p5), %s1918_s14, 16, %s1916_s23, %s1090_s24  }
 0x38c PF: > { %p1393_p8 = scmp.ge.s32.totalorder %s1545_s12, 2  ;;  %s1131_s25 = sand.u32 1, %s1533_s30  }
 0x38d   : > { %s1132_s27 = scalar_lea.sflag [#allocation3], %s1131_s25 }
 0x38e   : > { %p1387_p9 = pnand %p1393_p8, %p1644_p6 }
 0x390   : > { %1524 = dma.done.wait (!%p1387_p9), %s1132_s27, 16  }
 0x391   : > { %1526 = vsyncadd (!%p1387_p9), %s1132_s27, 4294967280  ;;  %s1140_s29 = scalar_lea.sflag [#allocation5], %s1131_s25 }
 0x392   : > { %1528 = dma.done.wait (!%p1387_p9), %s1140_s29, 16  }
 0x393   : > { %1530 = vsyncadd (!%p1387_p9), %s1140_s29, 4294967280  ;;  %p23_p5 = scmp.ge.s32.totalorder %s1627_s15, 4   ;;  %s1971_s30 = smov %s1537_s10 }
 0x394   : > { %s1972_s10 = smov %s1541_s11  ;;  %s1973_s11 = smov %s1638_s18 }
 0x395   : > { %s1974_s12 = smov %s1627_s15  ;;  %25 = sbr.rel (!%p23_p5) target bundleno = 5 (0x5), region = 107 }
 0x39c   :  { %1144 = vsyncpa [#allocation3], 1 }
 0x39d   :  { %1146 = vsyncpa [#allocation3 + $0x1], 1 }
 0x39e   :  { %1147 = vsyncpa [#allocation5], 1 }
 0x39f   :  { %1149 = vsyncpa [#allocation5 + $0x1], 1 }

</bundles_post_ra>
